<compile_context>
chip_gen: v7x
topology: tpu7x:2x2x1
jax: 0.10.0
libtpu: 0.0.40
codegen_flags: <defaults>
</compile_context>

<pallas_src>
import functools

import jax
import jax.numpy as jnp
from jax import lax
from jax.experimental import pallas as pl
from jax.experimental.pallas import tpu as pltpu

_MAX_MARGIN = 0.5  # module __init__: self._margin = FloatTensor([0.5])
_COS_EPS = 1e-8    # torch.cosine_similarity default eps


def _mse_sts_loss_kernel(scale_ref, a_ref, b_ref, labels_ref, out_ref, *,
                         tile_b, batch, inv_b, inv_d):
    step = pl.program_id(0)
    n_steps = pl.num_programs(0)

    a = a_ref[...].astype(jnp.float32)            # (TB, D)
    b = b_ref[...].astype(jnp.float32)            # (TB, D)
    labels = labels_ref[...].astype(jnp.float32)  # (TB, 1)
    scale = scale_ref[0]                          # scalar from SMEM (prefetched)

    # Row-validity mask for the (possibly partial) last tile.
    row = step * tile_b + lax.broadcasted_iota(jnp.int32, (tile_b, 1), 0)
    valid = row < batch                           # (TB, 1) bool

    # rep_a = rep_a / ||rep_a||   -> rsqrt (EUP) + multiply (VPU), no wide divide.
    sa = jnp.sum(a * a, axis=1, keepdims=True)            # (TB, 1)
    a_n = a * lax.rsqrt(sa)
    # rep_b = rep_b / ||rep_a_normalized||  (faithful to the PyTorch reassignment order).
    sann = jnp.sum(a_n * a_n, axis=1, keepdims=True)      # ~1.0, reused below
    b_n = b * lax.rsqrt(sann)

    # Row scalars reused for cosine AND distance (no extra (TB, D) passes).
    dot = jnp.sum(a_n * b_n, axis=1, keepdims=True)       # (TB, 1)
    sbnn = jnp.sum(b_n * b_n, axis=1, keepdims=True)      # (TB, 1)
    wa = jnp.sqrt(sann)
    wb = jnp.sqrt(sbnn)
    # Per-row divide only (TB elements): keep it exact.
    cos = dot / jnp.maximum(wa * wb, _COS_EPS)            # (TB, 1)

    # distance = mean((a_n - b_n)^2, dim=1) = (||a_n||^2 + ||b_n||^2 - 2*dot) / D
    distance = (sann + sbnn - 2.0 * dot) * inv_d
    # t_loss = max(scale * distance, margin)  (final assignment in the torch code)
    t_loss = jnp.maximum(scale * distance, _MAX_MARGIN)

    per_row = (cos - labels) ** 2 + t_loss                # (TB, 1)
    per_row = jnp.where(valid, per_row, 0.0)              # mask padded rows
    tile_sum = jnp.sum(per_row, axis=0, keepdims=True)    # (1, 1)

    # Output block is resident across the grid -> use it as the accumulator.
    @pl.when(step == 0)
    def _():
        out_ref[...] = jnp.zeros_like(out_ref)

    out_ref[...] += tile_sum

    @pl.when(step == n_steps - 1)
    def _():
        # mean((cos-labels)^2) + mean(t_loss) == (sum of per-row totals) / B
        out_ref[...] = out_ref[...] * inv_b


def _round_up(x, m):
    return ((x + m - 1) // m) * m


def mse_sts_loss(rep_a, rep_b, labels, scale, *, tile_b=None):
    """rep_a, rep_b: (B, D); labels: (B,); scale: scalar. Returns scalar f32 loss."""
    B, D = rep_a.shape
    assert rep_b.shape == (B, D)

    if tile_b is None:
        # ~2 MiB (f32) per (TB, D) input block: 2 inputs x 2 pipeline buffers x 2 MiB
        # = 8 MiB of pipeline VMEM plus in-kernel temporaries stays well under the
        # 32 MiB scoped-VMEM limit requested below (safe on v5e/v6e/v7x).
        tile_b = max(8, (2 * 1024 * 1024) // (D * 4))
    tile_b = min(int(tile_b), _round_up(B, 8), 2048)
    tile_b = max(8, (tile_b // 8) * 8)

    grid = (pl.cdiv(B, tile_b),)

    labels2d = labels.reshape(B, 1).astype(jnp.float32)
    scale_arr = jnp.asarray(scale, dtype=jnp.float32).reshape(1)

    kernel = functools.partial(
        _mse_sts_loss_kernel,
        tile_b=tile_b, batch=B, inv_b=1.0 / B, inv_d=1.0 / D,
    )

    out = pl.pallas_call(
        kernel,
        out_shape=jax.ShapeDtypeStruct((1, 1), jnp.float32),
        grid_spec=pltpu.PrefetchScalarGridSpec(
            num_scalar_prefetch=1,                         # scale -> SMEM
            grid=grid,
            in_specs=[
                pl.BlockSpec((tile_b, D), lambda i, s: (i, 0)),   # rep_a tile
                pl.BlockSpec((tile_b, D), lambda i, s: (i, 0)),   # rep_b tile
                pl.BlockSpec((tile_b, 1), lambda i, s: (i, 0)),   # labels tile
            ],
            out_specs=pl.BlockSpec((1, 1), lambda i, s: (0, 0)),  # resident accumulator
        ),
        compiler_params=pltpu.CompilerParams(
            dimension_semantics=("arbitrary",),            # reduction axis
            vmem_limit_bytes=32 * 1024 * 1024,
        ),
    )(scale_arr, rep_a, rep_b, labels2d)
    return out[0, 0]


def _reference_loss(rep_a, rep_b, labels, scale):
    # Literal re-statement of the PyTorch forward (for validation).
    a = rep_a.astype(jnp.float32)
    b = rep_b.astype(jnp.float32)
    norm_a = jnp.linalg.norm(a, axis=1, keepdims=True)
    a_n = a / norm_a
    norm_a_n = jnp.linalg.norm(a_n, axis=1, keepdims=True)
    b_n = b / norm_a_n
    dot = jnp.sum(a_n * b_n, axis=1)
    cos = dot / jnp.maximum(
        jnp.linalg.norm(a_n, axis=1) * jnp.linalg.norm(b_n, axis=1), _COS_EPS)
    loss = jnp.mean((cos - labels.astype(jnp.float32)) ** 2)
    distance = jnp.mean((a_n - b_n) ** 2, axis=1)
    t_loss = jnp.maximum(scale * distance, _MAX_MARGIN)
    return loss + jnp.mean(t_loss)


if __name__ == "__main__":
    key = jax.random.PRNGKey(0)
    B, F_IN, D = 20, 32, 128

    # Stand-in for self.model(sentence_feature)['sentence_embedding']: a deterministic
    # linear encoder applied in plain JAX glue (the loss hot path is the Pallas kernel).
    k1, k2, k3, k4 = jax.random.split(key, 4)
    feats_a = jax.random.normal(k1, (B, F_IN), dtype=jnp.float32)
    feats_b = jax.random.normal(k2, (B, F_IN), dtype=jnp.float32)
    w_enc = jax.random.normal(k3, (F_IN, D), dtype=jnp.float32) / jnp.sqrt(F_IN)
    rep_a = feats_a @ w_enc
    rep_b = feats_b @ w_enc

    labels = jax.random.uniform(k4, (B,), dtype=jnp.float32)  # target similarities
    scale = 0.7

    ref = jax.block_until_ready(_reference_loss(rep_a, rep_b, labels, scale))

    # tile_b=8 -> grid=(3,), last tile partial (4 valid rows): exercises cross-step
    # accumulation and the padded-row mask.
    loss_tiled = jax.block_until_ready(mse_sts_loss(rep_a, rep_b, labels, scale, tile_b=8))
    assert jnp.allclose(loss_tiled, ref, rtol=1e-5, atol=1e-5), (loss_tiled, ref)

    # Auto-picked tile (single tile here) covers the default path.
    loss_auto = jax.block_until_ready(mse_sts_loss(rep_a, rep_b, labels, scale))
    assert jnp.allclose(loss_auto, ref, rtol=1e-5, atol=1e-5), (loss_auto, ref)

    print("KERNEL_OK")
</pallas_src>

<mosaic_0001>
module attributes {stable_mosaic.version = 11 : i64} {
  func.func @_mse_sts_loss_kernel(%arg0: i32, %arg1: memref<1xf32, #tpu.memory_space<smem>>, %arg2: memref<8x128xf32, #tpu.memory_space<vmem>>, %arg3: memref<8x128xf32, #tpu.memory_space<vmem>>, %arg4: memref<8x1xf32, #tpu.memory_space<vmem>>, %arg5: memref<1x1xf32, #tpu.memory_space<vmem>>) attributes {dimension_semantics = [#tpu.dimension_semantics<arbitrary>], iteration_bounds = array<i64: 3>, scalar_prefetch = 1 : i64, scratch_operands = 0 : i64, tpu.core_type = #tpu.core_type<tc>, window_params = [{transform_indices = @transform_0, window_bounds = array<i64: 8, 128>}, {transform_indices = @transform_1, window_bounds = array<i64: 8, 128>}, {transform_indices = @transform_2, window_bounds = array<i64: 8, 1>}, {pipeline_mode = #tpu.pipeline_mode<synchronous>, transform_indices = @transform_3, window_bounds = array<i64: 1, 1>}]} {
    %c0 = arith.constant 0 : index
    %c0_0 = arith.constant 0 : index
    %0 = vector.load %arg2[%c0, %c0_0] : memref<8x128xf32, #tpu.memory_space<vmem>>, vector<8x128xf32>
    %c0_1 = arith.constant 0 : index
    %c0_2 = arith.constant 0 : index
    %1 = vector.load %arg3[%c0_1, %c0_2] : memref<8x128xf32, #tpu.memory_space<vmem>>, vector<8x128xf32>
    %c0_3 = arith.constant 0 : index
    %c0_4 = arith.constant 0 : index
    %2 = vector.load %arg4[%c0_3, %c0_4] : memref<8x1xf32, #tpu.memory_space<vmem>>, vector<8x1xf32>
    %c0_5 = arith.constant 0 : index
    %3 = memref.load %arg1[%c0_5] : memref<1xf32, #tpu.memory_space<smem>>
    %c8_i32 = arith.constant 8 : i32
    %4 = arith.muli %arg0, %c8_i32 : i32
    %5 = tpu.iota {dimensions = array<i32: 0>} : vector<8x1xi32>
    %6 = vector.broadcast %4 : i32 to vector<8x1xi32>
    %7 = arith.addi %6, %5 : vector<8x1xi32>
    %c20_i32 = arith.constant 20 : i32
    %8 = vector.broadcast %c20_i32 : i32 to vector<8x1xi32>
    %9 = arith.cmpi slt, %7, %8 : vector<8x1xi32>
    %10 = arith.mulf %0, %0 : vector<8x128xf32>
    %cst = arith.constant dense<0.000000e+00> : vector<8xf32>
    %11 = vector.multi_reduction <add>, %10, %cst [1] : vector<8x128xf32> to vector<8xf32>
    %12 = vector.shape_cast %11 : vector<8xf32> to vector<8x1xf32>
    %13 = math.rsqrt %12 : vector<8x1xf32>
    %14 = vector.broadcast %13 : vector<8x1xf32> to vector<8x128xf32>
    %15 = arith.mulf %0, %14 : vector<8x128xf32>
    %16 = arith.mulf %15, %15 : vector<8x128xf32>
    %cst_6 = arith.constant dense<0.000000e+00> : vector<8xf32>
    %17 = vector.multi_reduction <add>, %16, %cst_6 [1] : vector<8x128xf32> to vector<8xf32>
    %18 = vector.shape_cast %17 : vector<8xf32> to vector<8x1xf32>
    %19 = math.rsqrt %18 : vector<8x1xf32>
    %20 = vector.broadcast %19 : vector<8x1xf32> to vector<8x128xf32>
    %21 = arith.mulf %1, %20 : vector<8x128xf32>
    %22 = arith.mulf %15, %21 : vector<8x128xf32>
    %cst_7 = arith.constant dense<0.000000e+00> : vector<8xf32>
    %23 = vector.multi_reduction <add>, %22, %cst_7 [1] : vector<8x128xf32> to vector<8xf32>
    %24 = vector.shape_cast %23 : vector<8xf32> to vector<8x1xf32>
    %25 = arith.mulf %21, %21 : vector<8x128xf32>
    %cst_8 = arith.constant dense<0.000000e+00> : vector<8xf32>
    %26 = vector.multi_reduction <add>, %25, %cst_8 [1] : vector<8x128xf32> to vector<8xf32>
    %27 = vector.shape_cast %26 : vector<8xf32> to vector<8x1xf32>
    %28 = math.sqrt %18 : vector<8x1xf32>
    %29 = math.sqrt %27 : vector<8x1xf32>
    %30 = arith.mulf %28, %29 : vector<8x1xf32>
    %cst_9 = arith.constant 9.99999993E-9 : f32
    %31 = vector.broadcast %cst_9 : f32 to vector<8x1xf32>
    %32 = arith.maximumf %30, %31 : vector<8x1xf32>
    %33 = arith.divf %24, %32 : vector<8x1xf32>
    %34 = arith.addf %18, %27 : vector<8x1xf32>
    %cst_10 = arith.constant 2.000000e+00 : f32
    %35 = vector.broadcast %cst_10 : f32 to vector<8x1xf32>
    %36 = arith.mulf %35, %24 : vector<8x1xf32>
    %37 = arith.subf %34, %36 : vector<8x1xf32>
    %cst_11 = arith.constant 7.812500e-03 : f32
    %38 = vector.broadcast %cst_11 : f32 to vector<8x1xf32>
    %39 = arith.mulf %37, %38 : vector<8x1xf32>
    %40 = vector.broadcast %3 : f32 to vector<8x1xf32>
    %41 = arith.mulf %40, %39 : vector<8x1xf32>
    %cst_12 = arith.constant 5.000000e-01 : f32
    %42 = vector.broadcast %cst_12 : f32 to vector<8x1xf32>
    %43 = arith.maximumf %41, %42 : vector<8x1xf32>
    %44 = arith.subf %33, %2 : vector<8x1xf32>
    %45 = arith.mulf %44, %44 : vector<8x1xf32>
    %46 = arith.addf %45, %43 : vector<8x1xf32>
    %cst_13 = arith.constant 0.000000e+00 : f32
    %47 = vector.broadcast %cst_13 : f32 to vector<8x1xf32>
    %48 = arith.select %9, %46, %47 : vector<8x1xi1>, vector<8x1xf32>
    %cst_14 = arith.constant dense<0.000000e+00> : vector<1xf32>
    %49 = vector.multi_reduction <add>, %48, %cst_14 [0] : vector<8x1xf32> to vector<1xf32>
    %50 = vector.shape_cast %49 : vector<1xf32> to vector<1x1xf32>
    %c0_i32 = arith.constant 0 : i32
    %51 = arith.cmpi eq, %arg0, %c0_i32 : i32
    %52 = arith.extui %51 : i1 to i32
    %c0_i32_15 = arith.constant 0 : i32
    %53 = arith.cmpi ne, %52, %c0_i32_15 : i32
    scf.if %53 {
      %cst_21 = arith.constant 0.000000e+00 : f32
      %60 = vector.broadcast %cst_21 : f32 to vector<1x1xf32>
      %c0_22 = arith.constant 0 : index
      %c0_23 = arith.constant 0 : index
      %61 = vector.load %arg5[%c0_22, %c0_23] : memref<1x1xf32, #tpu.memory_space<vmem>>, vector<1x1xf32>
      tpu.vector_store %arg5[%c0_22, %c0_23], %60 {strides = array<i32>} : memref<1x1xf32, #tpu.memory_space<vmem>>, vector<1x1xf32>,
    } else {
    }
    %c0_16 = arith.constant 0 : index
    %c0_17 = arith.constant 0 : index
    %54 = vector.load %arg5[%c0_16, %c0_17] : memref<1x1xf32, #tpu.memory_space<vmem>>, vector<1x1xf32>
    %55 = arith.addf %54, %50 : vector<1x1xf32>
    %c0_18 = arith.constant 0 : index
    %c0_19 = arith.constant 0 : index
    %56 = vector.load %arg5[%c0_18, %c0_19] : memref<1x1xf32, #tpu.memory_space<vmem>>, vector<1x1xf32>
    tpu.vector_store %arg5[%c0_18, %c0_19], %55 {strides = array<i32>} : memref<1x1xf32, #tpu.memory_space<vmem>>, vector<1x1xf32>,
    %c2_i32 = arith.constant 2 : i32
    %57 = arith.cmpi eq, %arg0, %c2_i32 : i32
    %58 = arith.extui %57 : i1 to i32
    %c0_i32_20 = arith.constant 0 : i32
    %59 = arith.cmpi ne, %58, %c0_i32_20 : i32
    scf.if %59 {
      %c0_21 = arith.constant 0 : index
      %c0_22 = arith.constant 0 : index
      %60 = vector.load %arg5[%c0_21, %c0_22] : memref<1x1xf32, #tpu.memory_space<vmem>>, vector<1x1xf32>
      %cst_23 = arith.constant 5.000000e-02 : f32
      %61 = vector.broadcast %cst_23 : f32 to vector<1x1xf32>
      %62 = arith.mulf %60, %61 : vector<1x1xf32>
      %c0_24 = arith.constant 0 : index
      %c0_25 = arith.constant 0 : index
      %63 = vector.load %arg5[%c0_24, %c0_25] : memref<1x1xf32, #tpu.memory_space<vmem>>, vector<1x1xf32>
      tpu.vector_store %arg5[%c0_24, %c0_25], %62 {strides = array<i32>} : memref<1x1xf32, #tpu.memory_space<vmem>>, vector<1x1xf32>,
    } else {
    }
    return
  }
  func.func @transform_0(%arg0: i32, %arg1: memref<1xf32, #tpu.memory_space<smem>>) -> (i32, i32) {
    %c0_i32 = arith.constant 0 : i32
    %c0_i32_0 = arith.constant 0 : i32
    return %arg0, %c0_i32 : i32, i32
  }
  func.func @transform_1(%arg0: i32, %arg1: memref<1xf32, #tpu.memory_space<smem>>) -> (i32, i32) {
    %c0_i32 = arith.constant 0 : i32
    %c0_i32_0 = arith.constant 0 : i32
    return %arg0, %c0_i32 : i32, i32
  }
  func.func @transform_2(%arg0: i32, %arg1: memref<1xf32, #tpu.memory_space<smem>>) -> (i32, i32) {
    %c0_i32 = arith.constant 0 : i32
    %c0_i32_0 = arith.constant 0 : i32
    return %arg0, %c0_i32 : i32, i32
  }
  func.func @transform_3(%arg0: i32, %arg1: memref<1xf32, #tpu.memory_space<smem>>) -> (i32, i32) {
    %c0_i32 = arith.constant 0 : i32
    %c0_i32_0 = arith.constant 0 : i32
    %c0_i32_1 = arith.constant 0 : i32
    return %c0_i32, %c0_i32_0 : i32, i32
  }
}

</mosaic_0001>

<bundles_post_ra>
// kernel: tpu_custom_call.1
= control target key start
LH: loop header
LB: loop body
LE: loop exit
PB: predicated region body
PF: predicated region fallthrough
CT: control target
= control target key end

     0   :  { %s712_s0 = inlined_call_operand.<no memory space> [shape: f32[1], index: 0, kind: input, shape index: {}]   ;;  %s713_s1 = inlined_call_operand.vmem [shape: f32[20,128], index: 1, kind: input, shape index: {}]   ;;  %s714_s2 = inlined_call_operand.hbm [shape: f32[20,128], index: 2, kind: input, shape index: {}]   ;;  %s715_s3 = inlined_call_operand.vmem [shape: f32[20,1], index: 3, kind: input, shape index: {}]   ;;  %s716_s4 = inlined_call_operand.hbm [shape: f32[1,1], index: 4, kind: output, shape index: {}]  }
   0x1   :  { %9 = sst [smem:[#allocation3]] %s712_s0 }
   0x2   :  { %10 = vsyncpa [#allocation5], 0 }
   0x3   :  { %12 = vsyncpa [#allocation5 + $0x1], 0 }
   0x4   :  { %13 = vsyncpa [#allocation6], 0  ;;  %s569_s17 = smov 0   ;;  %s571_s18 = smov 0  }
   0x5   :  { %s573_s19 = smov 0   ;;  %s575_s20 = smov 0  }
   0x6 LB: > { %s588_s0 = sadd.s32 4294967295, %s536_s20   ;;  %s591_s21 = sadd.s32 1, %s536_s20   ;;  %s536_s20 = sphi %s575_s20, %s724_s20   ;;  %s532_s19 = sphi %s573_s19, %s723_s19   ;;  %s528_s18 = sphi %s571_s18, %s722_s18   ;;  %s524_s17 = sphi %s569_s17, %s721_s17  }
   0x7   : > { %s49_s22 = ssub.s32 %s536_s20, %s591_s21  ;;  %s52_s23 = sadd.s32 1, %s532_s19 }
   0x8   : > { %p50_p0 = scmp.eq.s32.totalorder %s49_s22, 0  ;;  %p59_p1 = scmp.ne.s32.totalorder %s532_s19, %s528_s18 }
   0x9   : > { %p60_p2 = scmp.eq.s32.totalorder %s536_s20, 0  ;;  %p65_p3 = scmp.ne.s32.totalorder %s528_s18, %s524_s17 }
   0xa   : > { %s601_s24 = scalar_select %p50_p0, %s532_s19, %s52_s23  }
   0xb   : > { %p61_p4 = por %p60_p2, %p59_p1  ;;  %p66_p5 = scmp.eq.s32.totalorder %s588_s0, 0 }
   0xc   : > { %p397_p6 = scmp.lt.s32.totalorder %s536_s20, 3  ;;  %s143_s26 = sand.u32 1, %s532_s19  }
   0xd   : > { %p605_p7 = por %p66_p5, %p65_p3  ;;  %s374_s27 = sshll.u32 %s143_s26, 3 }
   0xe   : > { %s375_s28 = sshll.u32 %s536_s20, 7  ;;  %s147_s6 = scalar_lea.vmem [#allocation4], %s374_s27 }
   0xf   : > { %s614_s5 = scalar_lea.hbm %s714_s2, %s375_s28  ;;  %s154_s7 = sshll.u32 %s147_s6, 4  ;;  %s616_s7 = int_to_ptr.vmem [resolvable:$true] %s154_s7 }
  0x10   : > { %p618_p8 = pnand %p397_p6, %p61_p4  ;;  %s144_s9 = scalar_lea.sflag [#allocation5], %s143_s26 }
  0x11   : > { %s442_s10 = scalar_lea.hbm %s614_s5, 128  ;;  %s447_s13 = scalar_lea.hbm %s714_s2, 384 }
  0x12   : > { %p443_p11 = scmp.ne.s32.totalorder %s614_s5, %s442_s10  ;;  %p444_p12 = pneg %p618_p8 }
  0x13   : > { %p448_p1 = scmp.lt.u32.totalorder %s614_s5, %s714_s2  ;;  %p449_p2 = scmp.lt.u32.totalorder %s447_s13, %s442_s10 }
  0x14   : > { %p445_p13 = pnand %p444_p12, %p443_p11  ;;  %p451_p4 = scmp.lt.u32.totalorder %s442_s10, %s614_s5 }
  0x15   : > { %p450_p3 = por %p449_p2, %p448_p1 }
  0x16   : > { %p446_p0 = pneg %p445_p13 }
  0x17   : > { %p452_p5 = por %p451_p4, %p450_p3 }
  0x19   : > { %p453_p6 = pnand %p452_p5, %p446_p0 }
  0x1b   : > { %456 = shalt.err (!%p453_p6)
}
  0x1c   : > { %s457_s16 = scalar_lea.vmem %s616_s7, 128  ;;  %s538_s17 = smov [#allocation4]  }
  0x1d   : > { %p458_p11 = scmp.ne.s32.totalorder %s616_s7, %s457_s16  ;;  %s462_s22 = sshll.u32 %s538_s17, 4  ;;  %s463_s22 = int_to_ptr.vmem [resolvable:$false] %s462_s22 }
  0x1e   : > { %s464_s23 = scalar_lea.vmem %s463_s22, 256  ;;  %p465_p10 = scmp.lt.s32.totalorder %s616_s7, %s463_s22 }
  0x1f   : > { %p460_p13 = pnand %p458_p11, %p444_p12  ;;  %p466_p1 = scmp.lt.s32.totalorder %s464_s23, %s457_s16 }
  0x21   : > { %p461_p9 = pneg %p460_p13  ;;  %p467_p2 = por %p466_p1, %p465_p10 }
  0x23   : > { %p468_p3 = pnand %p467_p2, %p461_p9 }
  0x25   : > { %471 = shalt.err (!%p468_p3)
}
  0x26   : > { %396 = dma.hbm_to_vmem [thread:$0]  (!%p618_p8), %s614_s5, 128, %s616_s7, %s144_s9  }
  0x27   : > { %p719_p0 = scmp.lt.s32.totalorder %s536_s20, 4  ;;  %p720_p4 = scmp.ge.s32.totalorder %s536_s20, 1 }
  0x29   : > { %p167_p12 = pnand %p720_p4, %p719_p0 }
  0x2a   : > { %s172_s26 = sand.u32 (!%p167_p12), 1, %s528_s18  }
  0x2b   : > { %170 = sbr.rel (%p167_p12) target bundleno = 606 (0x25e), region = 32  ;;  %s377_s27 = sshll.u32 (!%p167_p12), %s172_s26, 3 }
  0x2c   : > { %s173_s28 = scalar_lea.sflag (!%p167_p12), [#allocation5], %s172_s26  ;;  %s176_s29 = scalar_lea.vmem (!%p167_p12), [#allocation4], %s377_s27 }
  0x32   : > { %515 = dma.done.wait (%p605_p7), %s173_s28, 128  }
  0x33   : > { %517 = vsyncadd (%p605_p7), %s173_s28, 4294967168  ;;  %p202_p9 = scmp.lt.s32.totalorder %s588_s0, 2  ;;  %v211_v7 = vld [vmem:[%s176_s29] sm:$0xff]  ;;  %s213_s25 = sld [smem:[#allocation3]]  ;;  %v215_v28 = vlaneseq  ;;  %vm265_vm5 = vcmask 7168  }
  0x34   : > { %s380_s8 = sshll.u32 %s588_s0, 3  ;;  %p381_p7 = scmp.ne.s32.totalorder %s588_s0, 0 }
  0x35   : > { %s660_s30 = scalar_select %p202_p9, %s588_s0, 2  ;;  %v216_v31 = vshrl.u32 %v215_v28, 7  ;;  %v217_v32 = vstv %s380_s8 }
  0x36   : > { %vm277_vm6 = vcmask (!%p381_p7), 0   ;;  %v539_v50 = vmov (!%p381_p7), 0.0  }
  0x37   : > { %s378_s20 = sshll.u32 %s660_s30, 3  ;;  %v218_v37 = vadd.s32 %v217_v32, %v216_v31  ;;  %278 = vst.msk [vmem:[#allocation7] sm:$0x1] (!%p381_p7), %vm277_vm6, %v539_v50 }
  0x38   : > { %s205_s7 = scalar_lea.vmem %s713_s1, %s378_s20  ;;  %s209_s11 = scalar_lea.vmem %s715_s3, %s378_s20 }
  0x39   : > { %v210_v0 = vld [vmem:[%s205_s7] sm:$0xff]  ;;  %v258_v30 = vstv %s213_s25  ;;  %vm219_vm4 = vcmp.lt.s32.totalorder %v218_v37, 20 }
  0x3a   : > { %v220_v1 = vmul.f32 %v210_v0, %v210_v0  ;;  %v212_v34 = vld [vmem:[%s209_s11] sm:$0xff] }
  0x3c   : > { %221 = vadd.xlane.f32.xlu0 %v220_v1 }
  0xc9   : > { %v222_v2 = vpop.xlane.xlu0 %221 }
  0xca   : > { %434 = vrsqrt.f32 %v222_v2 }
  0xd4   : > { %v435_v3 = vpop.eup %434 }
  0xd5   : > { %v224_v4 = vmul.f32 %v435_v3, %v210_v0 }
  0xd7   : > { %v225_v5 = vmul.f32 %v224_v4, %v224_v4 }
  0xd9   : > { %226 = vadd.xlane.f32.xlu0 %v225_v5 }
 0x166   : > { %v227_v6 = vpop.xlane.xlu0 %226 }
 0x167   : > { %436 = vrsqrt.f32 %v227_v6  ;;  %vm238_vm0 = vcmp.eq.f32.partialorder %v227_v6, inf  ;;  %v241_v17 = vand.u32 2147483648, %v227_v6  ;;  %vm240_vm2 = vcmp.eq.f32.partialorder %v227_v6, 0.0 }
 0x171   : > { %v437_v8 = vpop.eup %436 }
 0x172   : > { %v229_v9 = vmul.f32 %v437_v8, %v211_v7  ;;  %v237_v13 = vmul.f32 %v437_v8, %v227_v6 }
 0x174   : > { %v233_v10 = vmul.f32 %v229_v9, %v229_v9  ;;  %v230_v11 = vmul.f32 %v229_v9, %v224_v4  ;;  %v239_v15 = vsel %vm238_vm0, %v227_v6, %v237_v13 }
 0x175   : > { %v242_v20 = vsel %vm240_vm2, %v241_v17, %v239_v15 }
 0x176   : > { %234 = vadd.xlane.f32.xlu1 %v233_v10 }
 0x17a   : > { %231 = vadd.xlane.f32.xlu1 %v230_v11 }
 0x203   : > { %v235_v12 = vpop.xlane.xlu1 %234 }
 0x204   : > { %438 = vrsqrt.f32 %v235_v12  ;;  %vm245_vm1 = vcmp.eq.f32.partialorder %v235_v12, inf  ;;  %v248_v18 = vand.u32 2147483648, %v235_v12  ;;  %vm247_vm3 = vcmp.eq.f32.partialorder %v235_v12, 0.0 }
 0x205   : > { %v254_v26 = vadd.f32 %v235_v12, %v227_v6 }
 0x207   : > { %v232_v23 = vpop.xlane.xlu1 %231 }
 0x208   : > { %v255_v25 = vmul.f32 2.0, %v232_v23 }
 0x20a   : > { %v256_v27 = vsub.f32 %v254_v26, %v255_v25 }
 0x20c   : > { %v257_v29 = vmul.f32 0.0078125, %v256_v27 }
 0x20e   : > { %v439_v14 = vpop.eup %438  ;;  %v259_v36 = vmul.f32 %v258_v30, %v257_v29 }
 0x20f   : > { %v244_v16 = vmul.f32 %v439_v14, %v235_v12 }
 0x210   : > { %v260_v39 = vmax.f32 %v259_v36, 0.5 }
 0x211   : > { %v246_v19 = vsel %vm245_vm1, %v235_v12, %v244_v16 }
 0x212   : > { %v249_v21 = vsel %vm247_vm3, %v248_v18, %v246_v19 }
 0x213   : > { %v250_v22 = vmul.f32 %v249_v21, %v242_v20 }
 0x215   : > { %v251_v24 = vmax.f32 %v250_v22, 1e-08 }
 0x217   : > { %440 = vrcp.f32 %v251_v24 }
 0x221   : > { %v441_v33 = vpop.eup %440 }
 0x222   : > { %v253_v35 = vmul.f32 %v441_v33, %v232_v23 }
 0x224   : > { %v261_v38 = vsub.f32 %v253_v35, %v212_v34 }
 0x226   : > { %v262_v40 = vmul.f32 %v261_v38, %v261_v38 }
 0x228   : > { %v263_v41 = vadd.f32 %v262_v40, %v260_v39 }
 0x22a   : > { %v264_v42 = vsel %vm219_vm4, %v263_v41, 0.0 }
 0x22b   : > { %v266_v43 = vsel %vm265_vm5, %v264_v42, 0.0 }
 0x22c   : > { %v267_v44 = vrot.slane %v266_v43, 4 }
 0x22e   : > { %v268_v45 = vadd.f32 %v267_v44, %v266_v43 }
 0x230   : > { %v269_v46 = vrot.slane %v268_v45, 2  ;;  %276 = sbr.rel (%p381_p7) target bundleno = 567 (0x237), region = 40 }
 0x232   : > { %v270_v47 = vadd.f32 %v269_v46, %v268_v45 }
 0x234   : > { %v271_v48 = vrot.slane %v270_v47, 1 }
 0x236   : > { %v272_v49 = vadd.f32 %v271_v48, %v270_v47 }
 0x237 PF: > { %v279_v51 = vld [vmem:[#allocation7] sm:$0x1]  ;;  %vm281_vm7 = vcmask 0   ;;  %p382_p8 = scmp.ne.s32.totalorder %s588_s0, 2 }
 0x238   : > { %v280_v52 = vadd.f32 %v279_v51, %v272_v49 }
 0x239   : > { %286 = sbr.rel (%p382_p8) target bundleno = 581 (0x245), region = 44 }
 0x23a   : > { %282 = vst.msk [vmem:[#allocation7] sm:$0x1] %vm281_vm7, %v280_v52 }
 0x241   : > { %v287_v53 = vld [vmem:[#allocation7] sm:$0x1] }
 0x242   : > { %v288_v54 = vmul.f32 0.05, %v287_v53 }
 0x244   : > { %289 = vst.msk [vmem:[#allocation7] sm:$0x1] %vm281_vm7, %v288_v54 }
 0x245 PF: > { %p398_p10 = scmp.eq.s32.totalorder %s588_s0, 2  ;;  %s540_s12 = smov [#allocation7]  }
 0x246   : > { %s297_s13 = sshll.u32 %s540_s12, 4  ;;  %s298_s13 = int_to_ptr.vmem [resolvable:$true] %s297_s13 }
 0x247   : > { %s472_s14 = scalar_lea.vmem %s298_s13, 16  ;;  %s478_s15 = scalar_lea.vmem %s298_s13, 32 }
 0x248   : > { %p473_p5 = scmp.ne.s32.totalorder %s298_s13, %s472_s14  ;;  %p479_p13 = scmp.lt.s32.totalorder %s298_s13, %s298_s13 }
 0x249   : > { %p480_p1 = scmp.lt.s32.totalorder %s478_s15, %s472_s14 }
 0x24a   : > { %p474_p6 = pnand %p473_p5, %p398_p10 }
 0x24b   : > { %p481_p2 = por %p480_p1, %p479_p13 }
 0x24c   : > { %p475_p11 = pneg %p474_p6 }
 0x24e   : > { %p482_p3 = pnand %p481_p2, %p475_p11 }
 0x250   : > { %485 = shalt.err (!%p482_p3)
}
 0x251   : > { %s486_s22 = scalar_lea.hbm %s716_s4, 16 }
 0x252   : > { %p487_p0 = scmp.ne.s32.totalorder %s716_s4, %s486_s22  ;;  %p492_p9 = scmp.lt.u32.totalorder %s486_s22, %s716_s4 }
 0x254   : > { %p488_p4 = pnand %p487_p0, %p398_p10 }
 0x256   : > { %p489_p12 = pneg %p488_p4 }
 0x258   : > { %p494_p7 = pnand %p492_p9, %p489_p12 }
 0x25a   : > { %497 = shalt.err (!%p494_p7)
}
 0x25b   : > { %390 = dma.vmem_to_hbm [thread:$0]  (%p398_p10), %s298_s13, 16, %s716_s4, [#allocation6]  }
 0x25c   : > { %519 = dma.done.wait (%p398_p10), [#allocation6], 16  }
 0x25d   : > { %521 = vsyncadd (%p398_p10), [#allocation6], 4294967280 }
 0x25e PF: > { %p16_p8 = scmp.ge.s32.totalorder %s591_s21, 5   ;;  %s721_s17 = smov %s528_s18 }
 0x25f   : > { %s722_s18 = smov %s532_s19  ;;  %s723_s19 = smov %s601_s24 }
 0x260   : > { %s724_s20 = smov %s591_s21  ;;  %18 = sbr.rel (!%p16_p8) target bundleno = 6 (0x6), region = 83 }
 0x267   :  { %310 = vsyncpa [#allocation5], 1 }
 0x268   :  { %312 = vsyncpa [#allocation5 + $0x1], 1 }
 0x269   :  { %313 = vsyncpa [#allocation6], 1 }
 0x26a   :  { %315 = vsyncpa [#allocation6 + $0x1], 1 }

</bundles_post_ra>
